<compile_context>
chip_gen: v7x
topology: tpu7x:2x2x1
jax: 0.10.0
libtpu: 0.0.40
codegen_flags: <defaults>
</compile_context>

<pallas_src>
import jax
import jax.numpy as jnp
from jax.experimental import pallas as pl
from jax.experimental.pallas import tpu as pltpu

NUM_LABELS = 8          # stand-in for len(LABELS_NAMES)
LN_EPS = 1e-5           # PyTorch nn.LayerNorm default eps
TARGET_GRID_STEPS = 8   # keep the pipeline (and both v7x TCs) busy
MAX_BATCH_TILE = 8192   # rows per grid step; tiny VMEM footprint at F=32


def _round_up(x, m):
    return ((x + m - 1) // m) * m


def _choose_batch_tile(b):
    """Batch tile: multiple of 8 sublanes, ~TARGET_GRID_STEPS steps, capped."""
    b8 = _round_up(b, 8)
    tb = _round_up(pl.cdiv(b8, TARGET_GRID_STEPS), 8)
    return max(8, min(tb, MAX_BATCH_TILE, b8))


def _fasttext_kernel(x_ref, w_ref, b_ref, o_ref):
    # x: [TB, F]; LayerNorm statistics in f32 (biased variance, like PyTorch).
    x = x_ref[...].astype(jnp.float32)
    mean = jnp.mean(x, axis=-1, keepdims=True)
    xc = x - mean
    var = jnp.mean(xc * xc, axis=-1, keepdims=True)
    xhat = xc * jax.lax.rsqrt(var + LN_EPS)                     # [TB, F]

    # Single fused matmul: [TB, F] @ [F, L] + [1, L], f32 accumulation.
    logits = jnp.dot(xhat.astype(w_ref.dtype), w_ref[...],
                     preferred_element_type=jnp.float32) + b_ref[...]

    # Exact sigmoid via tanh: one EUP op per element, no exp overflow.
    o_ref[...] = (0.5 * (jnp.tanh(0.5 * logits) + 1.0)).astype(o_ref.dtype)


def prepare_params(gamma, beta, w1, b1, w2, b2, *, matmul_dtype=jnp.float32):
    """One-time weight prep (constant-folds under jit).

    gamma/beta: [F] LayerNorm affine.  w1: [F, F], b1: [F], w2: [L, F], b2: [L]
    in PyTorch (out_features, in_features) layout.
    matmul_dtype=jnp.bfloat16 is fine on v5e/v6e/v7x (only the MXU input
    narrows; LayerNorm math and accumulation stay in f32).
    """
    L = w2.shape[0]
    w1_t = w1.astype(jnp.float32).T                             # [F, F] (in,out)
    w2_t = w2.astype(jnp.float32).T                             # [F, L]
    w_fused = w1_t @ w2_t                                       # [F, L]
    b_fused = b1.astype(jnp.float32) @ w2_t + b2.astype(jnp.float32)   # [L]
    # Fold LN affine: (xhat*g + beta) @ W + b == xhat @ (diag(g)W) + (beta@W + b)
    w_fold = gamma.astype(jnp.float32)[:, None] * w_fused       # [F, L]
    b_fold = beta.astype(jnp.float32) @ w_fused + b_fused       # [L]
    return {"w": w_fold.astype(matmul_dtype),
            "b": b_fold.reshape(1, L).astype(jnp.float32),
            "num_labels": L}


def simple_fasttext_classifier(x, params):
    """x: [B, F] features; params from prepare_params(). Returns [B, L] f32."""
    w, b, L = params["w"], params["b"], params["num_labels"]
    B, F = x.shape

    tb = _choose_batch_tile(B)
    b_pad = _round_up(B, tb)
    x_in = x if b_pad == B else jnp.pad(x, ((0, b_pad - B), (0, 0)))
    # TODO(synk): optionally cast x_in to bf16 here to halve input HBM bytes
    # (keep the in-kernel f32 cast for LayerNorm stats).

    out = pl.pallas_call(
        _fasttext_kernel,
        out_shape=jax.ShapeDtypeStruct((b_pad, L), jnp.float32),
        grid=(b_pad // tb,),
        in_specs=[
            pl.BlockSpec((tb, F), lambda i: (i, 0)),        # x tile (pipelined)
            pl.BlockSpec((F, L), lambda i: (0, 0)),         # fused W (resident)
            pl.BlockSpec((1, L), lambda i: (0, 0)),         # fused b (resident)
        ],
        out_specs=pl.BlockSpec((tb, L), lambda i: (i, 0)),  # narrow f32 output
        compiler_params=pltpu.CompilerParams(
            dimension_semantics=("parallel",)),             # megacore on v7x
        cost_estimate=pl.CostEstimate(
            flops=2 * b_pad * F * L + 8 * b_pad * F,
            transcendentals=b_pad * L,
            bytes_accessed=(b_pad * F * x_in.dtype.itemsize   # input stream
                            + b_pad * L * 4                   # output stream
                            + F * L * w.dtype.itemsize + L * 4),
        ),
    )(x_in, w, b)

    return out if b_pad == B else out[:B]


def _reference(x, gamma, beta, w1, b1, w2, b2):
    mean = jnp.mean(x, axis=-1, keepdims=True)
    var = jnp.mean((x - mean) ** 2, axis=-1, keepdims=True)
    xn = (x - mean) / jnp.sqrt(var + LN_EPS) * gamma + beta
    h = xn @ w1.T + b1
    logits = h @ w2.T + b2
    return jax.nn.sigmoid(logits)


if __name__ == "__main__":
    # Keep the pure-JAX reference (and the one-time weight fold) at full f32
    # matmul precision so the comparison isn't polluted by bf16 default dots.
    jax.config.update("jax_default_matmul_precision", "highest")

    B, F = 8, 32
    key = jax.random.PRNGKey(0)
    kx, k1, k2, k3, k4 = jax.random.split(key, 5)

    x = jax.random.normal(kx, (B, F), dtype=jnp.float32)

    # LayerNorm params (PyTorch default init: ones / zeros)
    gamma = jnp.ones((F,), jnp.float32)
    beta = jnp.zeros((F,), jnp.float32)

    # Linear params in PyTorch layout (out_features, in_features)
    bound = 1.0 / F ** 0.5
    w1 = jax.random.uniform(k1, (F, F), jnp.float32, -bound, bound)
    b1 = jax.random.uniform(k2, (F,), jnp.float32, -bound, bound)
    w2 = jax.random.uniform(k3, (NUM_LABELS, F), jnp.float32, -bound, bound)
    b2 = jax.random.uniform(k4, (NUM_LABELS,), jnp.float32, -bound, bound)

    params = prepare_params(gamma, beta, w1, b1, w2, b2)  # one-time prep
    out = simple_fasttext_classifier(x, params)
    out = jax.block_until_ready(out)

    ref = _reference(x, gamma, beta, w1, b1, w2, b2)
    assert out.shape == (B, NUM_LABELS)
    # Exact tanh-based sigmoid + f32 fold: only matmul-order rounding remains.
    assert jnp.allclose(out, ref, atol=1e-4, rtol=1e-4), "mismatch vs reference"

    print("KERNEL_OK")
</pallas_src>

<mosaic_0001>
module attributes {stable_mosaic.version = 11 : i64} {
  func.func @_fasttext_kernel(%arg0: i32, %arg1: memref<8x32xf32, #tpu.memory_space<vmem>>, %arg2: memref<32x8xf32, #tpu.memory_space<vmem>>, %arg3: memref<1x8xf32, #tpu.memory_space<vmem>>, %arg4: memref<8x8xf32, #tpu.memory_space<vmem>>) attributes {dimension_semantics = [#tpu.dimension_semantics<parallel>], iteration_bounds = array<i64: 1>, scalar_prefetch = 0 : i64, scratch_operands = 0 : i64, tpu.core_type = #tpu.core_type<tc>, window_params = [{transform_indices = @transform_0, window_bounds = array<i64: 8, 32>}, {pipeline_mode = #tpu.pipeline_mode<synchronous>, transform_indices = @transform_1, window_bounds = array<i64: 32, 8>}, {pipeline_mode = #tpu.pipeline_mode<synchronous>, transform_indices = @transform_2, window_bounds = array<i64: 1, 8>}, {transform_indices = @transform_3, window_bounds = array<i64: 8, 8>}]} {
    %c0 = arith.constant 0 : index
    %c0_0 = arith.constant 0 : index
    %0 = vector.load %arg1[%c0, %c0_0] : memref<8x32xf32, #tpu.memory_space<vmem>>, vector<8x32xf32>
    %cst = arith.constant dense<0.000000e+00> : vector<8xf32>
    %1 = vector.multi_reduction <add>, %0, %cst [1] : vector<8x32xf32> to vector<8xf32>
    %2 = vector.shape_cast %1 : vector<8xf32> to vector<8x1xf32>
    %cst_1 = arith.constant 3.200000e+01 : f32
    %3 = vector.broadcast %cst_1 : f32 to vector<8x1xf32>
    %4 = arith.divf %2, %3 : vector<8x1xf32>
    %5 = vector.broadcast %4 : vector<8x1xf32> to vector<8x32xf32>
    %6 = arith.subf %0, %5 : vector<8x32xf32>
    %7 = arith.mulf %6, %6 : vector<8x32xf32>
    %cst_2 = arith.constant dense<0.000000e+00> : vector<8xf32>
    %8 = vector.multi_reduction <add>, %7, %cst_2 [1] : vector<8x32xf32> to vector<8xf32>
    %9 = vector.shape_cast %8 : vector<8xf32> to vector<8x1xf32>
    %cst_3 = arith.constant 3.200000e+01 : f32
    %10 = vector.broadcast %cst_3 : f32 to vector<8x1xf32>
    %11 = arith.divf %9, %10 : vector<8x1xf32>
    %cst_4 = arith.constant 9.99999974E-6 : f32
    %12 = vector.broadcast %cst_4 : f32 to vector<8x1xf32>
    %13 = arith.addf %11, %12 : vector<8x1xf32>
    %14 = math.rsqrt %13 : vector<8x1xf32>
    %15 = vector.broadcast %14 : vector<8x1xf32> to vector<8x32xf32>
    %16 = arith.mulf %6, %15 : vector<8x32xf32>
    %c0_5 = arith.constant 0 : index
    %c0_6 = arith.constant 0 : index
    %17 = vector.load %arg2[%c0_5, %c0_6] : memref<32x8xf32, #tpu.memory_space<vmem>>, vector<32x8xf32>
    %cst_7 = arith.constant dense<0.000000e+00> : vector<8x8xf32>
    %18 = tpu.matmul %16, %17, %cst_7 {dimension_numbers = #tpu.dot_dimension_numbers<[1], [0], [0], [1], [0, 0, 1, 1], [], []>, precision = #tpu.contract_precision<fp32>} : vector<8x32xf32>, vector<32x8xf32>, vector<8x8xf32> -> vector<8x8xf32>
    %c0_8 = arith.constant 0 : index
    %c0_9 = arith.constant 0 : index
    %19 = vector.load %arg3[%c0_8, %c0_9] : memref<1x8xf32, #tpu.memory_space<vmem>>, vector<1x8xf32>
    %20 = vector.broadcast %19 : vector<1x8xf32> to vector<8x8xf32>
    %21 = arith.addf %18, %20 : vector<8x8xf32>
    %cst_10 = arith.constant 5.000000e-01 : f32
    %22 = vector.broadcast %cst_10 : f32 to vector<8x8xf32>
    %23 = arith.mulf %22, %21 : vector<8x8xf32>
    %24 = math.tanh %23 : vector<8x8xf32>
    %cst_11 = arith.constant 1.000000e+00 : f32
    %25 = vector.broadcast %cst_11 : f32 to vector<8x8xf32>
    %26 = arith.addf %24, %25 : vector<8x8xf32>
    %cst_12 = arith.constant 5.000000e-01 : f32
    %27 = vector.broadcast %cst_12 : f32 to vector<8x8xf32>
    %28 = arith.mulf %27, %26 : vector<8x8xf32>
    %c0_13 = arith.constant 0 : index
    %c0_14 = arith.constant 0 : index
    %29 = vector.load %arg4[%c0_13, %c0_14] : memref<8x8xf32, #tpu.memory_space<vmem>>, vector<8x8xf32>
    tpu.vector_store %arg4[%c0_13, %c0_14], %28 {strides = array<i32>} : memref<8x8xf32, #tpu.memory_space<vmem>>, vector<8x8xf32>,
    return
  }
  func.func @transform_0(%arg0: i32) -> (i32, i32) {
    %c0_i32 = arith.constant 0 : i32
    %c0_i32_0 = arith.constant 0 : i32
    return %arg0, %c0_i32 : i32, i32
  }
  func.func @transform_1(%arg0: i32) -> (i32, i32) {
    %c0_i32 = arith.constant 0 : i32
    %c0_i32_0 = arith.constant 0 : i32
    %c0_i32_1 = arith.constant 0 : i32
    return %c0_i32, %c0_i32_0 : i32, i32
  }
  func.func @transform_2(%arg0: i32) -> (i32, i32) {
    %c0_i32 = arith.constant 0 : i32
    %c0_i32_0 = arith.constant 0 : i32
    %c0_i32_1 = arith.constant 0 : i32
    return %c0_i32, %c0_i32_0 : i32, i32
  }
  func.func @transform_3(%arg0: i32) -> (i32, i32) {
    %c0_i32 = arith.constant 0 : i32
    %c0_i32_0 = arith.constant 0 : i32
    return %arg0, %c0_i32 : i32, i32
  }
}

</mosaic_0001>

<bundles_post_ra>
// kernel: tpu_custom_call.1
= control target key start
LH: loop header
LB: loop body
LE: loop exit
PB: predicated region body
PF: predicated region fallthrough
CT: control target
= control target key end

     0   :  { %vm16_vm0 = vcmask 261120   ;;  %s811_s0 = inlined_call_operand.vmem [shape: f32[8,32], index: 0, kind: input, shape index: {}]   ;;  %s812_s1 = inlined_call_operand.vmem [shape: f32[32,8], index: 1, kind: input, shape index: {}]   ;;  %s813_s2 = inlined_call_operand.vmem [shape: f32[1,8], index: 2, kind: input, shape index: {}]   ;;  %s814_s3 = inlined_call_operand.hbm [shape: f32[8,8], index: 3, kind: output, shape index: {}]  }
   0x1   :  { %v15_v0 = vld [vmem:[%s811_s0] sm:$0xff] }
   0x2   :  { %8 = vsyncpa [#allocation3], 0  ;;  %v17_v1 = vsel %vm16_vm0, %v15_v0, 0.0  ;;  %v31_v7 = vld [vmem:[%s812_s1] sm:$0xff]  ;;  %v32_v8 = vld [vmem:[%s812_s1 + $0x8] sm:$0xff]  ;;  %v725_v10 = vmov 0.0|0.0  }
   0x3   :  { %18 = vadd.xlane.f32.xlu0 %v17_v1  ;;  %v33_v9 = vld [vmem:[%s812_s1 + $0x10] sm:$0xff]  ;;  %665 = vmatprep.subr.bf16.mxu0 %v725_v10  ;;  %v46_v11 = vand.u32 4294901760, %v31_v7  ;;  %v49_v12 = vand.u32 4294901760, %v32_v8  ;;  %v34_v13 = vld [vmem:[%s812_s1 + $0x18] sm:$0xff]  ;;  %vm726_vm1 = vmmov 0   ;;  %v727_v16 = vmov 0.0  }
   0x4   :  { %647 = vmatprep.subr.bf16.mxu1 %v725_v10  ;;  %v52_v14 = vand.u32 4294901760, %v33_v9  ;;  %v55_v15 = vand.u32 4294901760, %v34_v13  ;;  %622 = vmatprep.mubr.msk.f32.mxu0 %vm726_vm1, %v727_v16  ;;  %v550_v54 = vld [vmem:[%s813_s2] ss:$0 sm:$0xff]  ;;  %s728_s22 = smov [#allocation2]   ;;  %vm534_vm2 = vcmask 64512  }
   0x5   :  { %589 = vmatprep.mubr.msk.f32.mxu1 %vm726_vm1, %v727_v16  ;;  %v648_v17 = vpack.c.bf16 %v49_v12, %v46_v11  ;;  %v126_v18 = vsub.f32 %v31_v7, %v46_v11  ;;  %v133_v19 = vsub.f32 %v32_v8, %v49_v12  ;;  %s542_s23 = sshll.u32 %s728_s22, 4  ;;  %s543_s23 = int_to_ptr.vmem [resolvable:$true] %s542_s23 }
   0x6   :  { %v772_v20 = vsub.f32 %v33_v9, %v52_v14  ;;  %v147_v21 = vsub.f32 %v34_v13, %v55_v15  ;;  %v651_v22 = vpack.c.bf16 %v55_v15, %v52_v14  ;;  %s701_s24 = scalar_lea.vmem %s543_s23, 128  ;;  %p706_p1 = scmp.lt.s32.totalorder %s543_s23, %s543_s23 }
   0x7   :  { %667 = vmatpush3.bf16.msra.mxu0 %v648_v17  ;;  %649 = vmatpush3.bf16.msra.mxu1 %v648_v17  ;;  %v127_v23 = vand.u32 4294901760, %v126_v18  ;;  %v134_v24 = vand.u32 4294901760, %v133_v19  ;;  %v660_v39 = vpack.c.bf16 %v133_v19, %v126_v18  ;;  %p702_p0 = scmp.ne.s32.totalorder %s543_s23, %s701_s24  ;;  %p707_p2 = scmp.lt.s32.totalorder %s701_s24, %s701_s24 }
   0x8   :  { %668 = vmatprep.subr.bf16.mxu0 %v725_v10  ;;  %650 = vmatprep.subr.bf16.mxu1 %v725_v10  ;;  %v141_v30 = vand.u32 4294901760, %v772_v20  ;;  %v148_v31 = vand.u32 4294901760, %v147_v21  ;;  %v663_v40 = vpack.c.bf16 %v147_v21, %v772_v20 }
   0x9   :  { %v672_v25 = vpack.c.bf16 %v134_v24, %v127_v23  ;;  %v128_v26 = vsub.f32 %v126_v18, %v127_v23  ;;  %v135_v27 = vsub.f32 %v133_v19, %v134_v24  ;;  %p708_p3 = por %p707_p2, %p706_p1 }
   0xa   :  { %v675_v33 = vpack.c.bf16 %v148_v31, %v141_v30  ;;  %v142_v34 = vsub.f32 %v772_v20, %v141_v30  ;;  %v149_v35 = vsub.f32 %v147_v21, %v148_v31 }
   0xb   :  { %670 = vmatpush3.bf16.msra.mxu0 %v651_v22  ;;  %652 = vmatpush3.bf16.msra.mxu1 %v651_v22  ;;  %v129_v28 = vand.u32 4294901760, %v128_v26  ;;  %v136_v29 = vand.u32 4294901760, %v135_v27  ;;  %p709_p4 = pnand %p708_p3, %p702_p0 }
   0xc   :  { %671 = vmatprep.subr.bf16.mxu0 %v725_v10  ;;  %653 = vmatprep.subr.bf16.mxu1 %v725_v10  ;;  %v143_v36 = vand.u32 4294901760, %v142_v34  ;;  %v150_v37 = vand.u32 4294901760, %v149_v35 }
   0xd   :  { %v654_v32 = vpack.c.bf16 %v136_v29, %v129_v28 }
   0xe   :  { %v657_v38 = vpack.c.bf16 %v150_v37, %v143_v36 }
  0x90   :  { %v19_v2 = vpop.xlane.xlu0 %18 }
  0x91   :  { %v21_v3 = vmul.f32 0.03125, %v19_v2 }
  0x93   :  { %v22_v4 = vsub.f32 %v15_v0, %v21_v3 }
  0x95   :  { %v23_v5 = vmul.f32 %v22_v4, %v22_v4 }
  0x97   :  { %v24_v6 = vsel %vm16_vm0, %v23_v5, 0.0 }
  0x98   :  { %25 = vadd.xlane.f32.xlu0 %v24_v6 }
 0x125   :  { %v26_v41 = vpop.xlane.xlu0 %25 }
 0x126   :  { %v27_v42 = vmul.f32 0.03125, %v26_v41 }
 0x128   :  { %v28_v43 = vadd.f32 1e-05, %v27_v42 }
 0x12a   :  { %697 = vrsqrt.f32 %v28_v43 }
 0x134   :  { %v698_v44 = vpop.eup %697 }
 0x135   :  { %v30_v45 = vmul.f32 %v698_v44, %v22_v4 }
 0x137   :  { %v43_v46 = vsel %vm16_vm0, %v30_v45, 0 }
 0x138   :  { %v114_v47 = vand.u32 4294901760, %v43_v46 }
 0x13a   :  { %v115_v48 = vsub.f32 %v43_v46, %v114_v47 }
 0x13c   :  { %v116_v49 = vand.u32 4294901760, %v115_v48 }
 0x13e   :  { %623 = vmatmul.mubr.f32.vlgmr.msra.gmra.mrb[0].mxu0 %v116_v49  ;;  %v117_v50 = vsub.f32 %v115_v48, %v116_v49 }
 0x13f   :  { %673 = vmatpush3.bf16.msra.mxu0 %v672_v25  ;;  %633 = vmatprep.mubr.msk.f32.mxu0 %vm726_vm1, %v727_v16 }
 0x140   :  { %v118_v51 = vand.u32 4294901760, %v117_v50  ;;  %674 = vmatprep.subr.bf16.mxu0 %v725_v10 }
 0x142   :  { %590 = vmatmul.mubr.f32.vlgmr.msra.gmra.mrb[0].mxu1 %v118_v51 }
 0x143   :  { %655 = vmatpush3.bf16.msra.mxu1 %v654_v32  ;;  %676 = vmatpush3.bf16.msra.mxu0 %v675_v33 }
 0x144   :  { %656 = vmatprep.subr.bf16.mxu1 %v725_v10  ;;  %677 = vmatprep.subr.bf16.mxu0 %v725_v10 }
 0x145   :  { %600 = vmatprep.mubr.msk.f32.mxu1 %vm726_vm1, %v727_v16 }
 0x146   :  { %634 = vmatmul.mubr.f32.vlgmr.msra.gmra.mrb[0].mxu0 %v114_v47 }
 0x147   :  { %658 = vmatpush3.bf16.msra.mxu1 %v657_v38  ;;  %679 = vmatpush3.bf16.msra.mxu0 %v648_v17 }
 0x148   :  { %659 = vmatprep.subr.bf16.mxu1 %v725_v10  ;;  %680 = vmatprep.subr.bf16.mxu0 %v725_v10 }
 0x149   :  { %644 = vmatprep.mubr.msk.f32.mxu0 %vm726_vm1, %v727_v16 }
 0x14a   :  { %601 = vmatmul.mubr.f32.vlgmr.msra.gmra.mrb[0].mxu1 %v114_v47 }
 0x14b   :  { %661 = vmatpush3.bf16.msra.mxu1 %v660_v39  ;;  %682 = vmatpush3.bf16.msra.mxu0 %v651_v22 }
 0x14c   :  { %662 = vmatprep.subr.bf16.mxu1 %v725_v10  ;;  %611 = vmatprep.mubr.msk.f32.mxu1 %vm726_vm1, %v727_v16 }
 0x14e   :  { %645 = vmatmul.mubr.f32.vlgmr.msra.gmra.mrb[0].mxu0 %v114_v47 }
 0x14f   :  { %664 = vmatpush3.bf16.msra.mxu1 %v663_v40 }
 0x152   :  { %612 = vmatmul.mubr.f32.vlgmr.msra.gmra.mrb[0].mxu1 %v115_v48 }
 0x221   :  { %v526_v52 = vpop.f32.mrb[0].mxu0 }
 0x222   :  { %v646_v53 = vpop.f32.mrb[1].mxu0 }
 0x225   :  { %v291_v55 = vpop.f32.mrb[0].mxu1 }
 0x226   :  { %v683_v56 = vadd.f32 %v550_v54, %v291_v55  ;;  %v613_v57 = vpop.f32.mrb[1].mxu1 }
 0x228   :  { %v684_v58 = vadd.f32 %v683_v56, %v526_v52 }
 0x22a   :  { %v530_v59 = vmul.f32 0.5, %v684_v58 }
 0x22c   :  { %699 = vtanh.f32 %v530_v59 }
 0x236   :  { %v700_v60 = vpop.eup %699 }
 0x237   :  { %v532_v61 = vadd.f32 1.0, %v700_v60 }
 0x239   :  { %v533_v62 = vmul.f32 0.5, %v532_v61 }
 0x23b   :  { %535 = vst.msk [vmem:[#allocation2] sm:$0xff] %vm534_vm2, %v533_v62 }
 0x23c   :  { %712 = shalt.err (!%p709_p4)
}
 0x23d   :  { %s713_s26 = scalar_lea.hbm %s814_s3, 128 }
 0x23e   :  { %p714_p5 = scmp.ne.s32.totalorder %s814_s3, %s713_s26  ;;  %p717_p6 = scmp.lt.u32.totalorder %s713_s26, %s814_s3 }
 0x240   :  { %p719_p7 = pnand %p717_p6, %p714_p5 }
 0x242   :  { %722 = shalt.err (!%p719_p7)
}
 0x243   :  { %545 = dma.vmem_to_hbm [thread:$0]  %s543_s23, 128, %s814_s3, [#allocation3]  }
 0x244   :  { %723 = dma.done.wait [#allocation3], 128  }
 0x245   :  { %724 = vsyncadd [#allocation3], 4294967168 }
 0x246   :  { %549 = vsyncpa [#allocation3], 1 }

</bundles_post_ra>
